<compile_context>
chip_gen: v7x
topology: tpu7x:2x2x1
jax: 0.10.0
libtpu: 0.0.40
codegen_flags: <defaults>
</compile_context>

<pallas_src>
import jax
import jax.numpy as jnp
from jax.experimental import pallas as pl
from jax.experimental.pallas import tpu as pltpu


# ----------------------------- Pallas kernel --------------------------------
def _bilstm_step_kernel(x_ref, h0_ref, c0_ref, w_ref, b_ref,
                        h_out_ref, c_out_ref):
    """Fused bidirectional LSTM cell, single timestep, both directions.

    x_ref  : (1, E)        embedded token
    h0_ref : (1, 2H)       [h0_fwd | h0_bwd]
    c0_ref : (1, 2H)       [c0_fwd | c0_bwd]
    w_ref  : (E + 2H, 8H)  fused weight block (see module docstring)
    b_ref  : (1, 8H)       fused bias (b_ih + b_hh), same column layout
    h_out_ref, c_out_ref : (1, 2H)   [fwd | bwd] new hidden / cell states
    """
    x = x_ref[...]                                   # (1, E)
    h0 = h0_ref[...]                                 # (1, 2H)
    c0 = c0_ref[...]                                 # (1, 2H)

    xh = jnp.concatenate([x, h0], axis=-1)           # (1, E + 2H)
    gates = jnp.dot(xh, w_ref[...],
                    preferred_element_type=jnp.float32) + b_ref[...]  # (1, 8H)

    two_h = h0.shape[-1]
    # gate-major column layout: [i | f | g | o], each 2H wide ([fwd | bwd])
    i_g = jax.nn.sigmoid(gates[:, 0 * two_h:1 * two_h])
    f_g = jax.nn.sigmoid(gates[:, 1 * two_h:2 * two_h])
    g_g = jnp.tanh(gates[:, 2 * two_h:3 * two_h])
    o_g = jax.nn.sigmoid(gates[:, 3 * two_h:4 * two_h])

    c_new = f_g * c0 + i_g * g_g                     # (1, 2H)
    h_new = o_g * jnp.tanh(c_new)                    # (1, 2H)

    h_out_ref[...] = h_new
    c_out_ref[...] = c_new


def _bidir_lstm_step(x, h0_cat, c0_cat, w_blk, b_blk):
    """One fused bidirectional LSTM step via a single pallas_call (no grid)."""
    two_h = h0_cat.shape[-1]
    vmem = pl.BlockSpec(memory_space=pltpu.MemorySpace.VMEM)
    h_cat, c_cat = pl.pallas_call(
        _bilstm_step_kernel,
        out_shape=(jax.ShapeDtypeStruct((1, two_h), jnp.float32),
                   jax.ShapeDtypeStruct((1, two_h), jnp.float32)),
        in_specs=[vmem, vmem, vmem, vmem, vmem],
        out_specs=(vmem, vmem),
    )(x, h0_cat, c0_cat, w_blk, b_blk)
    return h_cat, c_cat


# ------------------------- Parameter fusing / init ---------------------------
def _fuse_lstm_weights(w_ih, w_hh, b_ih, b_hh):
    """Build the fused weight block / bias used by the kernel.

    w_ih : (2, 4H, E)   PyTorch weight_ih_l0 / weight_ih_l0_reverse
    w_hh : (2, 4H, H)   PyTorch weight_hh_l0 / weight_hh_l0_reverse
    b_ih, b_hh : (2, 4H)

    Returns:
      w_blk : (E + 2H, 8H)  rows [0:E)    = W_ih^T (both directions),
                            rows [E:E+H)  = W_hh_fwd^T in fwd columns, 0 in bwd,
                            rows [E+H:E+2H) = 0 in fwd columns, W_hh_bwd^T in bwd.
      b_blk : (1, 8H)       b_ih + b_hh in the same column layout.
    Column layout (gate-major, direction-minor): gate k, dir d occupies
    columns [k*2H + d*H : k*2H + (d+1)*H], gate order (i, f, g, o) as in PyTorch.
    """
    num_dir, four_h, e = w_ih.shape
    h = four_h // 4
    w_blk = jnp.zeros((e + 2 * h, 8 * h), jnp.float32)
    b_blk = jnp.zeros((1, 8 * h), jnp.float32)
    for d in range(num_dir):
        for k in range(4):  # PyTorch gate order: input, forget, cell(g), output
            col = k * 2 * h + d * h
            w_blk = w_blk.at[0:e, col:col + h].set(
                jnp.transpose(w_ih[d, k * h:(k + 1) * h, :]))
            row = e + d * h
            w_blk = w_blk.at[row:row + h, col:col + h].set(
                jnp.transpose(w_hh[d, k * h:(k + 1) * h, :]))
            b_blk = b_blk.at[0, col:col + h].set(
                b_ih[d, k * h:(k + 1) * h] + b_hh[d, k * h:(k + 1) * h])
    return w_blk, b_blk


def init_params(key, input_size, embedding_size, hidden_size):
    """Deterministic init mimicking nn.Embedding + bidirectional nn.LSTM shapes.

    The fused (transposed, bias-summed) kernel weights are precomputed here so
    the per-token forward path launches no extra transpose/add XLA ops.
    """
    h = hidden_size // 2
    e = embedding_size
    k_emb, k_wih, k_whh, k_bih, k_bhh = jax.random.split(key, 5)
    bound = 1.0 / jnp.sqrt(jnp.float32(h))
    w_ih = jax.random.uniform(k_wih, (2, 4 * h, e), jnp.float32, -bound, bound)
    w_hh = jax.random.uniform(k_whh, (2, 4 * h, h), jnp.float32, -bound, bound)
    b_ih = jax.random.uniform(k_bih, (2, 4 * h), jnp.float32, -bound, bound)
    b_hh = jax.random.uniform(k_bhh, (2, 4 * h), jnp.float32, -bound, bound)
    w_blk, b_blk = _fuse_lstm_weights(w_ih, w_hh, b_ih, b_hh)
    return {
        # embedding_matrix stand-in (normally copied from numpy)
        "embedding": jax.random.normal(k_emb, (input_size, e), jnp.float32),
        # raw PyTorch-layout weights (kept only for the reference check)
        "w_ih": w_ih, "w_hh": w_hh, "b_ih": b_ih, "b_hh": b_hh,
        # fused kernel weights (precomputed once)
        "w_blk": w_blk, "b_blk": b_blk,
    }


# ------------------------------ Module forward --------------------------------
def bilstm_encoder_forward(params, token_id, hidden):
    """Equivalent of BiLSTMEncoder.forward(input, hidden).

    token_id : scalar int32 token index (the single-token input)
    hidden   : (h0, c0), each of shape (2, 1, hidden_size // 2)
    returns (output, (h_n, c_n)) with output shape (1, 1, hidden_size).
    """
    h0, c0 = hidden
    h = h0.shape[-1]
    # embedding lookup + view(1, 1, -1)  (plain-JAX glue)
    x = params["embedding"][token_id].reshape(1, -1)            # (1, E)
    h0_cat = h0.reshape(1, 2 * h)                               # [fwd | bwd]
    c0_cat = c0.reshape(1, 2 * h)

    h_cat, c_cat = _bidir_lstm_step(x, h0_cat, c0_cat,
                                    params["w_blk"], params["b_blk"])

    # seq_len == 1: output = concat(fwd_h, bwd_h) -> already contiguous in h_cat
    output = h_cat.reshape(1, 1, 2 * h)                         # metadata-only
    h_n = h_cat.reshape(2, 1, h)
    c_n = c_cat.reshape(2, 1, h)
    return output, (h_n, c_n)


# ------------------------------- Reference -----------------------------------
def _reference_forward(params, token_id, hidden):
    h0, c0 = hidden
    h = h0.shape[-1]
    x = params["embedding"][token_id].reshape(1, -1)
    hs, cs = [], []
    hi = jax.lax.Precision.HIGHEST
    for d in range(2):
        gates = (jnp.dot(x, params["w_ih"][d].T, precision=hi)
                 + params["b_ih"][d]
                 + jnp.dot(h0[d], params["w_hh"][d].T, precision=hi)
                 + params["b_hh"][d])
        i_g = jax.nn.sigmoid(gates[:, 0 * h:1 * h])
        f_g = jax.nn.sigmoid(gates[:, 1 * h:2 * h])
        g_g = jnp.tanh(gates[:, 2 * h:3 * h])
        o_g = jax.nn.sigmoid(gates[:, 3 * h:4 * h])
        c_new = f_g * c0[d] + i_g * g_g
        h_new = o_g * jnp.tanh(c_new)
        hs.append(h_new)
        cs.append(c_new)
    output = jnp.concatenate([hs[0], hs[1]], axis=-1).reshape(1, 1, 2 * h)
    return output, (jnp.stack(hs), jnp.stack(cs))


# --------------------------------- main --------------------------------------
if __name__ == "__main__":
    input_size = 10        # vocab size
    embedding_size = 32
    hidden_size = 32       # per-direction hidden = 16

    key = jax.random.PRNGKey(0)
    params = init_params(key, input_size, embedding_size, hidden_size)

    token_id = jnp.int32(3)
    # Use non-zero hidden state (initHidden() would be zeros) so the recurrent
    # (W_hh) path of the fused weight block is actually exercised.
    k_h, k_c = jax.random.split(jax.random.PRNGKey(1))
    h0 = 0.1 * jax.random.normal(k_h, (2, 1, hidden_size // 2), jnp.float32)
    c0 = 0.1 * jax.random.normal(k_c, (2, 1, hidden_size // 2), jnp.float32)

    output, (h_n, c_n) = bilstm_encoder_forward(params, token_id, (h0, c0))
    jax.block_until_ready((output, h_n, c_n))

    ref_out, (ref_h, ref_c) = _reference_forward(params, token_id, (h0, c0))
    assert output.shape == (1, 1, hidden_size)
    assert h_n.shape == (2, 1, hidden_size // 2)
    assert c_n.shape == (2, 1, hidden_size // 2)
    assert jnp.allclose(output, ref_out, atol=1e-4)
    assert jnp.allclose(h_n, ref_h, atol=1e-4)
    assert jnp.allclose(c_n, ref_c, atol=1e-4)

    print("KERNEL_OK")
</pallas_src>

<mosaic_0001>
module attributes {stable_mosaic.version = 11 : i64} {
  func.func @_bilstm_step_kernel(%arg0: memref<1x32xf32, #tpu.memory_space<vmem>>, %arg1: memref<1x32xf32, #tpu.memory_space<vmem>>, %arg2: memref<1x32xf32, #tpu.memory_space<vmem>>, %arg3: memref<64x128xf32, #tpu.memory_space<vmem>>, %arg4: memref<1x128xf32, #tpu.memory_space<vmem>>, %arg5: memref<1x32xf32, #tpu.memory_space<vmem>>, %arg6: memref<1x32xf32, #tpu.memory_space<vmem>>) attributes {dimension_semantics = [], scalar_prefetch = 0 : i64, scratch_operands = 0 : i64, tpu.core_type = #tpu.core_type<tc>} {
    %c0 = arith.constant 0 : index
    %c0_0 = arith.constant 0 : index
    %0 = vector.load %arg0[%c0, %c0_0] : memref<1x32xf32, #tpu.memory_space<vmem>>, vector<1x32xf32>
    %c0_1 = arith.constant 0 : index
    %c0_2 = arith.constant 0 : index
    %1 = vector.load %arg1[%c0_1, %c0_2] : memref<1x32xf32, #tpu.memory_space<vmem>>, vector<1x32xf32>
    %c0_3 = arith.constant 0 : index
    %c0_4 = arith.constant 0 : index
    %2 = vector.load %arg2[%c0_3, %c0_4] : memref<1x32xf32, #tpu.memory_space<vmem>>, vector<1x32xf32>
    %3 = tpu.concatenate %0, %1 in 1 : vector<1x32xf32>, vector<1x32xf32> -> vector<1x64xf32>
    %c0_5 = arith.constant 0 : index
    %c0_6 = arith.constant 0 : index
    %4 = vector.load %arg3[%c0_5, %c0_6] : memref<64x128xf32, #tpu.memory_space<vmem>>, vector<64x128xf32>
    %cst = arith.constant dense<0.000000e+00> : vector<1x128xf32>
    %5 = tpu.matmul %3, %4, %cst {dimension_numbers = #tpu.dot_dimension_numbers<[1], [0], [0], [1], [0, 0, 1, 1], [], []>} : vector<1x64xf32>, vector<64x128xf32>, vector<1x128xf32> -> vector<1x128xf32>
    %c0_7 = arith.constant 0 : index
    %c0_8 = arith.constant 0 : index
    %6 = vector.load %arg4[%c0_7, %c0_8] : memref<1x128xf32, #tpu.memory_space<vmem>>, vector<1x128xf32>
    %7 = arith.addf %5, %6 : vector<1x128xf32>
    %8 = vector.extract_strided_slice %7 {offsets = [0, 0], sizes = [1, 32], strides = [1, 1]} : vector<1x128xf32> to vector<1x32xf32>
    %9 = arith.negf %8 : vector<1x32xf32>
    %10 = math.exp %9 : vector<1x32xf32>
    %cst_9 = arith.constant 1.000000e+00 : f32
    %11 = vector.broadcast %cst_9 : f32 to vector<1x32xf32>
    %12 = arith.addf %11, %10 : vector<1x32xf32>
    %13 = arith.divf %11, %12 : vector<1x32xf32>
    %14 = vector.extract_strided_slice %7 {offsets = [0, 32], sizes = [1, 32], strides = [1, 1]} : vector<1x128xf32> to vector<1x32xf32>
    %15 = arith.negf %14 : vector<1x32xf32>
    %16 = math.exp %15 : vector<1x32xf32>
    %cst_10 = arith.constant 1.000000e+00 : f32
    %17 = vector.broadcast %cst_10 : f32 to vector<1x32xf32>
    %18 = arith.addf %17, %16 : vector<1x32xf32>
    %19 = arith.divf %17, %18 : vector<1x32xf32>
    %20 = vector.extract_strided_slice %7 {offsets = [0, 64], sizes = [1, 32], strides = [1, 1]} : vector<1x128xf32> to vector<1x32xf32>
    %21 = math.tanh %20 : vector<1x32xf32>
    %22 = vector.extract_strided_slice %7 {offsets = [0, 96], sizes = [1, 32], strides = [1, 1]} : vector<1x128xf32> to vector<1x32xf32>
    %23 = arith.negf %22 : vector<1x32xf32>
    %24 = math.exp %23 : vector<1x32xf32>
    %cst_11 = arith.constant 1.000000e+00 : f32
    %25 = vector.broadcast %cst_11 : f32 to vector<1x32xf32>
    %26 = arith.addf %25, %24 : vector<1x32xf32>
    %27 = arith.divf %25, %26 : vector<1x32xf32>
    %28 = arith.mulf %19, %2 : vector<1x32xf32>
    %29 = arith.mulf %13, %21 : vector<1x32xf32>
    %30 = arith.addf %28, %29 : vector<1x32xf32>
    %31 = math.tanh %30 : vector<1x32xf32>
    %32 = arith.mulf %27, %31 : vector<1x32xf32>
    %c0_12 = arith.constant 0 : index
    %c0_13 = arith.constant 0 : index
    %33 = vector.load %arg5[%c0_12, %c0_13] : memref<1x32xf32, #tpu.memory_space<vmem>>, vector<1x32xf32>
    tpu.vector_store %arg5[%c0_12, %c0_13], %32 {strides = array<i32>} : memref<1x32xf32, #tpu.memory_space<vmem>>, vector<1x32xf32>,
    %c0_14 = arith.constant 0 : index
    %c0_15 = arith.constant 0 : index
    %34 = vector.load %arg6[%c0_14, %c0_15] : memref<1x32xf32, #tpu.memory_space<vmem>>, vector<1x32xf32>
    tpu.vector_store %arg6[%c0_14, %c0_15], %30 {strides = array<i32>} : memref<1x32xf32, #tpu.memory_space<vmem>>, vector<1x32xf32>,
    return
  }
}

</mosaic_0001>

<bundles_post_ra>
// kernel: tpu_custom_call.1
= control target key start
LH: loop header
LB: loop body
LE: loop exit
PB: predicated region body
PF: predicated region fallthrough
CT: control target
= control target key end

     0   :  { %12 = vsyncpa [#allocation3], 0  ;;  %s496_s0 = inlined_call_operand.hbm [shape: f32[1,32], index: 0, kind: input, shape index: {}]   ;;  %s497_s1 = inlined_call_operand.vmem [shape: f32[1,32], index: 1, kind: input, shape index: {}]   ;;  %s498_s2 = inlined_call_operand.vmem [shape: f32[1,32], index: 2, kind: input, shape index: {}]   ;;  %s499_s3 = inlined_call_operand.hbm [shape: f32[64,128], index: 3, kind: input, shape index: {}]   ;;  %s500_s4 = inlined_call_operand.vmem [shape: f32[1,128], index: 4, kind: input, shape index: {}]   ;;  %s501_s5 = inlined_call_operand.hbm [shape: f32[1,32], index: 5, kind: output, shape index: {0}]   ;;  %s502_s6 = inlined_call_operand.hbm [shape: f32[1,32], index: 6, kind: output, shape index: {1}]  }
   0x1   :  { %13 = vsyncpa [#allocation6], 0 }
   0x2   :  { %14 = vsyncpa [#allocation4], 0 }
   0x3   :  { %15 = vsyncpa [#allocation9], 0  ;;  %s379_s21 = smov [#allocation2]   ;;  %s380_s23 = smov [#allocation5]  }
   0x4   :  { %s22_s22 = sshll.u32 %s379_s21, 4  ;;  %s35_s24 = sshll.u32 %s380_s23, 4  ;;  %s23_s22 = int_to_ptr.vmem [resolvable:$true] %s22_s22  ;;  %s426_s24 = int_to_ptr.vmem [resolvable:$true] %s35_s24 }
   0x5   :  { %s283_s27 = scalar_lea.hbm %s496_s0, 16 }
   0x6   :  { %p284_p0 = scmp.ne.s32.totalorder %s496_s0, %s283_s27  ;;  %p287_p1 = scmp.lt.u32.totalorder %s283_s27, %s496_s0 }
   0x8   :  { %p289_p2 = pnand %p287_p1, %p284_p0 }
   0xa   :  { %292 = shalt.err (!%p289_p2)
}
   0xb   :  { %s293_s8 = scalar_lea.vmem %s23_s22, 16  ;;  %s297_s9 = scalar_lea.vmem %s23_s22, 32 }
   0xc   :  { %p294_p3 = scmp.ne.s32.totalorder %s23_s22, %s293_s8  ;;  %p298_p4 = scmp.lt.s32.totalorder %s23_s22, %s23_s22 }
   0xd   :  { %p299_p5 = scmp.lt.s32.totalorder %s297_s9, %s293_s8 }
   0xf   :  { %p300_p6 = por %p299_p5, %p298_p4 }
  0x11   :  { %p301_p7 = pnand %p300_p6, %p294_p3 }
  0x13   :  { %304 = shalt.err (!%p301_p7)
}
  0x14   :  { %25 = dma.hbm_to_vmem [thread:$0]  %s496_s0, 16, %s23_s22, [#allocation3]  }
  0x15   :  { %s305_s14 = scalar_lea.hbm %s499_s3, 1024 }
  0x16   :  { %p306_p8 = scmp.ne.s32.totalorder %s499_s3, %s305_s14  ;;  %p309_p9 = scmp.lt.u32.totalorder %s305_s14, %s499_s3 }
  0x18   :  { %p311_p10 = pnand %p309_p9, %p306_p8 }
  0x1a   :  { %314 = shalt.err (!%p311_p10)
}
  0x1b   :  { %s315_s19 = scalar_lea.vmem %s426_s24, 1024  ;;  %p320_p12 = scmp.lt.s32.totalorder %s426_s24, %s426_s24 }
  0x1c   :  { %p316_p11 = scmp.ne.s32.totalorder %s426_s24, %s315_s19  ;;  %p321_p13 = scmp.lt.s32.totalorder %s315_s19, %s315_s19 }
  0x1e   :  { %p322_p0 = por %p321_p13, %p320_p12 }
  0x20   :  { %p323_p1 = pnand %p322_p0, %p316_p11 }
  0x22   :  { %326 = shalt.err (!%p323_p1)
}
  0x23   :  { %s381_s0 = smov 128   ;;  %s382_s20 = smov 8  }
  0x24   :  { %41 = dma.hbm_to_vmem [thread:$0]  %s499_s3, 1024, %s426_s24, [#allocation6], %s381_s0, %s381_s0, %s382_s20  }
  0x25   :  { %371 = dma.done.wait [#allocation3], 16  }
  0x26   :  { %372 = vsyncadd [#allocation3], 4294967280 }
  0x27   :  { %373 = dma.done.wait [#allocation6], 1024  }
  0x28   :  { %374 = vsyncadd [#allocation6], 4294966272  ;;  %v383_v0 = vmov 0.0|0.0   ;;  %vm384_vm0 = vmmov 0   ;;  %v385_v1 = vmov 0.0   ;;  %v63_v3 = vld [vmem:[#allocation5] sm:$0xff] }
  0x29   :  { %251 = vmatprep.subr.bf16.mxu0 %v383_v0  ;;  %248 = vmatprep.mubr.msk.f32.mxu0 %vm384_vm0, %v385_v1  ;;  %v219_v2 = vld [vmem:[%s497_s1] ss:$0 sm:$0xff]  ;;  %v64_v4 = vld [vmem:[#allocation5 + $0x8] sm:$0xff]  ;;  %s386_s26 = smov 32   ;;  %v65_v6 = vld [vmem:[#allocation5 + $0x10] sm:$0xff]  ;;  %vm61_vm1 = vcmask 261120  }
  0x2a   :  { %58 = vrot.lane.b32.xlu0 %v219_v2, %s386_s26  ;;  %v252_v5 = vpack.c.bf16 %v64_v4, %v63_v3  ;;  %v66_v7 = vld [vmem:[#allocation5 + $0x18] sm:$0xff]  ;;  %v67_v10 = vld [vmem:[#allocation5 + $0x20] sm:$0xff]  ;;  %v68_v11 = vld [vmem:[#allocation5 + $0x28] sm:$0xff]  ;;  %vm72_vm2 = vcmask 523264   ;;  %s387_s27 = smov 64   ;;  %s389_s28 = smov [#allocation8]  }
  0x2b   :  { %v255_v8 = vpack.c.bf16 %v66_v7, %v65_v6  ;;  %v222_v9 = vld [vmem:[%s498_s2] ss:$0 sm:$0xff]  ;;  %v258_v12 = vpack.c.bf16 %v68_v11, %v67_v10  ;;  %v69_v13 = vld [vmem:[#allocation5 + $0x30] sm:$0xff]  ;;  %s205_s29 = sshll.u32 %s389_s28, 4  ;;  %vm182_vm3 = vcmask 253952   ;;  %s206_s29 = int_to_ptr.vmem [resolvable:$true] %s205_s29 }
  0x2c   :  { %253 = vmatpush3.bf16.msra.mxu0 %v252_v5  ;;  %158 = vrot.lane.b32.xlu1 %v222_v9, %s386_s26  ;;  %v70_v14 = vld [vmem:[#allocation5 + $0x38] sm:$0xff]  ;;  %s327_s30 = scalar_lea.vmem %s206_s29, 16  ;;  %s331_s7 = scalar_lea.vmem %s206_s29, 32 }
  0x2d   :  { %254 = vmatprep.subr.bf16.mxu0 %v383_v0  ;;  %v261_v15 = vpack.c.bf16 %v70_v14, %v69_v13  ;;  %v50_v16 = vld [vmem:[#allocation2] sm:$0x1]  ;;  %p328_p2 = scmp.ne.s32.totalorder %s206_s29, %s327_s30  ;;  %p332_p3 = scmp.lt.s32.totalorder %s206_s29, %s206_s29 }
  0x2e   :  { %v71_v19 = vld [vmem:[%s500_s4] sm:$0x1]  ;;  %s388_s4 = smov 96   ;;  %p333_p4 = scmp.lt.s32.totalorder %s331_s7, %s327_s30 }
  0x30   :  { %256 = vmatpush3.bf16.msra.mxu0 %v255_v8  ;;  %p334_p5 = por %p333_p4, %p332_p3 }
  0x31   :  { %257 = vmatprep.subr.bf16.mxu0 %v383_v0 }
  0x32   :  { %p335_p6 = pnand %p334_p5, %p328_p2 }
  0x34   :  { %259 = vmatpush3.bf16.msra.mxu0 %v258_v12 }
  0x35   :  { %260 = vmatprep.subr.bf16.mxu0 %v383_v0 }
  0x38   :  { %262 = vmatpush3.bf16.msra.mxu0 %v261_v15 }
  0x9c   :  { %v59_v17 = vpop.permute.xlu0 %58 }
  0x9d   :  { %v62_v18 = vsel %vm61_vm1, %v50_v16, %v59_v17 }
  0x9e   :  { %249 = vmatmul.mubr.msk.f32.vlgmr.msra.gmra.mrb[0].mxu0 %vm72_vm2, %v62_v18  ;;  %v159_v30 = vpop.permute.xlu1 %158 }
 0x171   :  { %v142_v20 = vpop.f32.mrb[0].mxu0 }
 0x172   :  { %v143_v21 = vadd.f32 %v142_v20, %v71_v19  ;;  %v250_v22 = vpop.f32.mrb[1].mxu0 }
 0x174   :  { %275 = vtanh.f32 %v143_v21  ;;  %v221_v24 = vmul.f32 -1.442695, %v143_v21 }
 0x176   :  { %277 = vpow2.f32 %v221_v24 }
 0x17e   :  { %v276_v23 = vpop.eup %275 }
 0x17f   :  { %163 = vrot.lane.b32.xlu0 %v276_v23, %s387_s27 }
 0x180   :  { %v278_v25 = vpop.eup %277 }
 0x181   :  { %v149_v26 = vadd.f32 1.0, %v278_v25 }
 0x183   :  { %279 = vrcp.f32 %v149_v26 }
 0x18d   :  { %v280_v27 = vpop.eup %279 }
 0x18e   :  { %v161_v31 = vmul.f32 %v280_v27, %v159_v30 }
 0x1f1   :  { %v164_v28 = vpop.permute.xlu0 %163 }
 0x1f2   :  { %v166_v29 = vmul.f32 %v280_v27, %v164_v28 }
 0x1f4   :  { %168 = vrot.lane.b32.xlu1 %v166_v29, %s386_s26 }
 0x266   :  { %v169_v32 = vpop.permute.xlu1 %168 }
 0x267   :  { %v171_v33 = vadd.f32 %v169_v32, %v161_v31 }
 0x269   :  { %281 = vtanh.f32 %v171_v33 }
 0x273   :  { %v282_v34 = vpop.eup %281 }
 0x274   :  { %174 = vrot.lane.b32.xlu0 %v282_v34, %s387_s27 }
 0x278   :  { %185 = vrot.lane.b32.xlu0 %v171_v33, %s388_s4 }
 0x2e6   :  { %v175_v35 = vpop.permute.xlu0 %174 }
 0x2e7   :  { %v177_v36 = vmul.f32 %v280_v27, %v175_v35 }
 0x2e9   :  { %179 = vrot.lane.b32.xlu1 %v177_v36, %s386_s26 }
 0x2ea   :  { %v186_v37 = vpop.permute.xlu0 %185 }
 0x2eb   :  { %188 = vst.msk [vmem:[#allocation8] sm:$0x1] %vm182_vm3, %v186_v37 }
 0x2ec   :  { %338 = shalt.err (!%p335_p6)
}
 0x2ed   :  { %s339_s10 = scalar_lea.hbm %s502_s6, 16 }
 0x2ee   :  { %p340_p7 = scmp.ne.s32.totalorder %s502_s6, %s339_s10  ;;  %p343_p8 = scmp.lt.u32.totalorder %s339_s10, %s502_s6 }
 0x2f0   :  { %p345_p9 = pnand %p343_p8, %p340_p7 }
 0x2f2   :  { %348 = shalt.err (!%p345_p9)
}
 0x2f3   :  { %208 = dma.vmem_to_hbm [thread:$0]  %s206_s29, 16, %s502_s6, [#allocation9]  }
 0x2f4   :  { %s390_s17 = smov [#allocation7]  }
 0x2f5   :  { %s195_s18 = sshll.u32 %s390_s17, 4  ;;  %s196_s18 = int_to_ptr.vmem [resolvable:$true] %s195_s18 }
 0x2f6   :  { %s349_s19 = scalar_lea.vmem %s196_s18, 16  ;;  %s353_s0 = scalar_lea.vmem %s196_s18, 32 }
 0x2f7   :  { %p350_p10 = scmp.ne.s32.totalorder %s196_s18, %s349_s19  ;;  %p354_p11 = scmp.lt.s32.totalorder %s196_s18, %s196_s18 }
 0x2f8   :  { %p355_p12 = scmp.lt.s32.totalorder %s353_s0, %s349_s19 }
 0x2fa   :  { %p356_p13 = por %p355_p12, %p354_p11 }
 0x2fc   :  { %p357_p0 = pnand %p356_p13, %p350_p10 }
 0x35b   :  { %v180_v38 = vpop.permute.xlu1 %179 }
 0x35c   :  { %183 = vst.msk [vmem:[#allocation7] sm:$0x1] %vm182_vm3, %v180_v38 }
 0x35d   :  { %360 = shalt.err (!%p357_p0)
}
 0x35e   :  { %s361_s22 = scalar_lea.hbm %s501_s5, 16 }
 0x35f   :  { %p362_p1 = scmp.ne.s32.totalorder %s501_s5, %s361_s22  ;;  %p365_p2 = scmp.lt.u32.totalorder %s361_s22, %s501_s5 }
 0x361   :  { %p367_p3 = pnand %p365_p2, %p362_p1 }
 0x363   :  { %370 = shalt.err (!%p367_p3)
}
 0x364   :  { %198 = dma.vmem_to_hbm [thread:$0]  %s196_s18, 16, %s501_s5, [#allocation4]  }
 0x365   :  { %375 = dma.done.wait [#allocation4], 16  }
 0x366   :  { %376 = vsyncadd [#allocation4], 4294967280 }
 0x367   :  { %377 = dma.done.wait [#allocation9], 16  }
 0x368   :  { %378 = vsyncadd [#allocation9], 4294967280 }
 0x369   :  { %215 = vsyncpa [#allocation3], 1 }
 0x36a   :  { %216 = vsyncpa [#allocation6], 1 }
 0x36b   :  { %217 = vsyncpa [#allocation4], 1 }
 0x36c   :  { %218 = vsyncpa [#allocation9], 1 }

</bundles_post_ra>
